<compile_context>
chip_gen: v5e
topology: v5e:2x2
jax: 0.10.0
libtpu: 0.0.40
codegen_flags: <defaults>
</compile_context>

<pallas_src>
import functools

import jax
import jax.numpy as jnp
from jax import lax
from jax.experimental import pallas as pl
from jax.experimental.pallas import tpu as pltpu


_LANE = 128     # lane width: K tiles must be multiples of this
_SUBLANE = 8    # f32 sublane multiple: M is padded to this


def _round_up(x, m):
    return (x + m - 1) // m * m


def _choose_tk(mp, kp, itemsize, input_budget_bytes):
    """Largest multiple-of-128 K tile s.t. the double-buffered feature input
    stays inside `input_budget_bytes` of VMEM."""
    tk = input_budget_bytes // (2 * mp * itemsize)
    tk = max(_LANE, (tk // _LANE) * _LANE)
    return min(tk, kp)


def _prep_features(x, input_vmem_budget_bytes):
    """NCHW -> zero-padded (Mp, Kp) feature matrix + tiling parameters."""
    a, b, c, d = x.shape
    m, k = a * b, c * d
    mp = _round_up(m, _SUBLANE)
    kp = _round_up(k, _LANE)
    itemsize = jnp.dtype(x.dtype).itemsize
    tk = _choose_tk(mp, kp, itemsize, input_vmem_budget_bytes)
    kp = _round_up(kp, tk)          # K tiles divide evenly -> no ragged block
    feat = x.reshape(m, k)
    if (mp, kp) != (m, k):
        feat = jnp.pad(feat, ((0, mp - m), (0, kp - k)))   # zeros: exact for Gram
    return feat, m, k, mp, kp, tk, itemsize


# ---------------------------------------------------------------------------
# Kernels
# ---------------------------------------------------------------------------

def _gram_kernel(feat_ref, g_ref, *, inv_denom):
    """Accumulate G += feat_tile @ feat_tile.T over the K grid axis.

    The output block index is constant across the grid, so g_ref stays
    resident in VMEM and acts as the f32 accumulator.
    """
    k = pl.program_id(0)

    @pl.when(k == 0)
    def _init():
        g_ref[...] = jnp.zeros_like(g_ref)

    f = feat_ref[...]                      # native dtype (f32 or bf16) -> MXU
    g_ref[...] += lax.dot_general(
        f, f,
        dimension_numbers=(((1,), (1,)), ((), ())),   # NT: contract lane axes
        preferred_element_type=jnp.float32)

    @pl.when(k == pl.num_programs(0) - 1)
    def _finalize():
        g_ref[...] = g_ref[...] * inv_denom


def _style_loss_kernel(feat_ref, target_ref, loss_ref, acc_ref,
                       *, inv_denom, inv_count):
    """Fused: accumulate the Gram over K, then MSE against target at the end."""
    k = pl.program_id(0)

    @pl.when(k == 0)
    def _init():
        acc_ref[...] = jnp.zeros_like(acc_ref)

    f = feat_ref[...]
    acc_ref[...] += lax.dot_general(
        f, f,
        dimension_numbers=(((1,), (1,)), ((), ())),
        preferred_element_type=jnp.float32)

    @pl.when(k == pl.num_programs(0) - 1)
    def _finalize():
        diff = acc_ref[...] * inv_denom - target_ref[...]
        # Padded rows/cols are zero in both the Gram and the padded target, so
        # summing the full block and scaling by 1/(M*M) is exact.
        loss_ref[0, 0] = jnp.sum(diff * diff) * inv_count


# ---------------------------------------------------------------------------
# Wrappers
# ---------------------------------------------------------------------------

def _compiler_params(vmem_limit_bytes):
    kwargs = dict(dimension_semantics=("arbitrary",))   # K is a reduction axis
    if vmem_limit_bytes is not None:
        kwargs["vmem_limit_bytes"] = vmem_limit_bytes
    return pltpu.CompilerParams(**kwargs)


def gram_matrix(x, *, input_vmem_budget_bytes=8 * 1024 * 1024,
                vmem_limit_bytes=None):
    """G = (x.view(a*b, c*d) @ x.view(a*b, c*d).T) / (a*b*c*d), f32."""
    a, b, c, d = x.shape
    feat, m, _k, mp, kp, tk, itemsize = _prep_features(x, input_vmem_budget_bytes)
    inv_denom = 1.0 / float(a * b * c * d)

    cost = pl.CostEstimate(
        flops=2 * mp * mp * kp,
        transcendentals=0,
        bytes_accessed=mp * kp * itemsize + mp * mp * 4,
    )

    g = pl.pallas_call(
        functools.partial(_gram_kernel, inv_denom=inv_denom),
        out_shape=jax.ShapeDtypeStruct((mp, mp), jnp.float32),
        grid_spec=pltpu.PrefetchScalarGridSpec(
            num_scalar_prefetch=0,
            grid=(kp // tk,),
            in_specs=[pl.BlockSpec((mp, tk), lambda kk: (0, kk))],
            out_specs=pl.BlockSpec((mp, mp), lambda kk: (0, 0)),
        ),
        compiler_params=_compiler_params(vmem_limit_bytes),
        cost_estimate=cost,
    )(feat)
    return g[:m, :m]


def style_loss(x, target_gram, *, input_vmem_budget_bytes=8 * 1024 * 1024,
               vmem_limit_bytes=None):
    """mean((gram_matrix(x) - target_gram)**2), fused into one kernel."""
    a, b, c, d = x.shape
    feat, m, _k, mp, kp, tk, itemsize = _prep_features(x, input_vmem_budget_bytes)
    inv_denom = 1.0 / float(a * b * c * d)
    inv_count = 1.0 / float(m * m)

    tgt = target_gram.astype(jnp.float32)
    if mp != m:
        tgt = jnp.pad(tgt, ((0, mp - m), (0, mp - m)))

    cost = pl.CostEstimate(
        flops=2 * mp * mp * kp + 3 * mp * mp,
        transcendentals=0,
        bytes_accessed=mp * kp * itemsize + mp * mp * 4 + 4,
    )

    loss = pl.pallas_call(
        functools.partial(_style_loss_kernel,
                          inv_denom=inv_denom, inv_count=inv_count),
        out_shape=jax.ShapeDtypeStruct((1, 1), jnp.float32),
        grid_spec=pltpu.PrefetchScalarGridSpec(
            num_scalar_prefetch=0,
            grid=(kp // tk,),
            in_specs=[
                pl.BlockSpec((mp, tk), lambda kk: (0, kk)),   # feature K tiles
                pl.BlockSpec((mp, mp), lambda kk: (0, 0)),    # target, resident
            ],
            out_specs=pl.BlockSpec((1, 1), lambda kk: (0, 0)),
            scratch_shapes=[pltpu.VMEM((mp, mp), jnp.float32)],   # Gram accumulator
        ),
        compiler_params=_compiler_params(vmem_limit_bytes),
        cost_estimate=cost,
    )(feat, tgt)
    return loss[0, 0]


class StyleLoss:
    """JAX/Pallas equivalent of the PyTorch StyleLoss module."""

    def __init__(self, target_feature):
        # target gram is a detached constant computed at init
        self.target = gram_matrix(target_feature)
        self.loss = None

    def __call__(self, x):
        self.loss = style_loss(x, self.target)
        return x  # forward returns its input unchanged


# ---------------------------------------------------------------------------
# Pure-JAX reference for sanity checks
# ---------------------------------------------------------------------------

def _gram_ref(x):
    a, b, c, d = x.shape
    f = x.reshape(a * b, c * d).astype(jnp.float32)
    return (f @ f.T) / (a * b * c * d)


def _style_loss_ref(x, target):
    g = _gram_ref(x)
    return jnp.mean((g - target) ** 2)


if __name__ == "__main__":
    key = jax.random.PRNGKey(0)
    k1, k2, k3, k4 = jax.random.split(key, 4)

    # Case 1: small NCHW feature map (aligned K = 256).
    a, b, c, d = 2, 4, 16, 16
    target_feature = jax.random.normal(k1, (a, b, c, d), dtype=jnp.float32)
    x = jax.random.normal(k2, (a, b, c, d), dtype=jnp.float32)

    module = StyleLoss(target_feature)
    out = module(x)
    loss = module.loss
    out = jax.block_until_ready(out)
    loss = jax.block_until_ready(loss)

    ref_target = _gram_ref(target_feature)
    ref_loss = _style_loss_ref(x, ref_target)
    assert out.shape == x.shape and jnp.allclose(out, x)
    assert jnp.allclose(module.target, ref_target, rtol=1e-5, atol=1e-5)
    assert jnp.allclose(loss, ref_loss, rtol=1e-5, atol=1e-5)

    # Case 2: shapes that exercise the zero-padding paths (M=3, K=100).
    tf2 = jax.random.normal(k3, (1, 3, 10, 10), dtype=jnp.float32)
    x2 = jax.random.normal(k4, (1, 3, 10, 10), dtype=jnp.float32)
    module2 = StyleLoss(tf2)
    out2 = jax.block_until_ready(module2(x2))
    loss2 = jax.block_until_ready(module2.loss)
    ref_target2 = _gram_ref(tf2)
    ref_loss2 = _style_loss_ref(x2, ref_target2)
    assert jnp.allclose(out2, x2)
    assert jnp.allclose(module2.target, ref_target2, rtol=1e-5, atol=1e-5)
    assert jnp.allclose(loss2, ref_loss2, rtol=1e-5, atol=1e-5)

    print("KERNEL_OK")
</pallas_src>

<mosaic_0001>
module attributes {stable_mosaic.version = 11 : i64} {
  func.func @_gram_kernel(%arg0: i32, %arg1: memref<8x256xf32, #tpu.memory_space<vmem>>, %arg2: memref<8x8xf32, #tpu.memory_space<vmem>>) attributes {dimension_semantics = [#tpu.dimension_semantics<arbitrary>], iteration_bounds = array<i64: 1>, scalar_prefetch = 0 : i64, scratch_operands = 0 : i64, tpu.core_type = #tpu.core_type<tc>, window_params = [{transform_indices = @transform_0, window_bounds = array<i64: 8, 256>}, {pipeline_mode = #tpu.pipeline_mode<synchronous>, transform_indices = @transform_1, window_bounds = array<i64: 8, 8>}]} {
    %c0_i32 = arith.constant 0 : i32
    %0 = arith.cmpi eq, %arg0, %c0_i32 : i32
    %1 = arith.extui %0 : i1 to i32
    %c0_i32_0 = arith.constant 0 : i32
    %2 = arith.cmpi ne, %1, %c0_i32_0 : i32
    scf.if %2 {
      %cst_8 = arith.constant 0.000000e+00 : f32
      %11 = vector.broadcast %cst_8 : f32 to vector<8x8xf32>
      %c0_9 = arith.constant 0 : index
      %c0_10 = arith.constant 0 : index
      %12 = vector.load %arg2[%c0_9, %c0_10] : memref<8x8xf32, #tpu.memory_space<vmem>>, vector<8x8xf32>
      tpu.vector_store %arg2[%c0_9, %c0_10], %11 {strides = array<i32>} : memref<8x8xf32, #tpu.memory_space<vmem>>, vector<8x8xf32>,
    } else {
    }
    %c0 = arith.constant 0 : index
    %c0_1 = arith.constant 0 : index
    %3 = vector.load %arg1[%c0, %c0_1] : memref<8x256xf32, #tpu.memory_space<vmem>>, vector<8x256xf32>
    %c0_2 = arith.constant 0 : index
    %c0_3 = arith.constant 0 : index
    %4 = vector.load %arg2[%c0_2, %c0_3] : memref<8x8xf32, #tpu.memory_space<vmem>>, vector<8x8xf32>
    %cst = arith.constant dense<0.000000e+00> : vector<8x8xf32>
    %5 = tpu.matmul %3, %3, %cst {dimension_numbers = #tpu.dot_dimension_numbers<[1], [1], [0], [0], [0, 0, 1, 0], [], []>} : vector<8x256xf32>, vector<8x256xf32>, vector<8x8xf32> -> vector<8x8xf32>
    %6 = arith.addf %4, %5 : vector<8x8xf32>
    %c0_4 = arith.constant 0 : index
    %c0_5 = arith.constant 0 : index
    %7 = vector.load %arg2[%c0_4, %c0_5] : memref<8x8xf32, #tpu.memory_space<vmem>>, vector<8x8xf32>
    tpu.vector_store %arg2[%c0_4, %c0_5], %6 {strides = array<i32>} : memref<8x8xf32, #tpu.memory_space<vmem>>, vector<8x8xf32>,
    %c0_i32_6 = arith.constant 0 : i32
    %8 = arith.cmpi eq, %arg0, %c0_i32_6 : i32
    %9 = arith.extui %8 : i1 to i32
    %c0_i32_7 = arith.constant 0 : i32
    %10 = arith.cmpi ne, %9, %c0_i32_7 : i32
    scf.if %10 {
      %c0_8 = arith.constant 0 : index
      %c0_9 = arith.constant 0 : index
      %11 = vector.load %arg2[%c0_8, %c0_9] : memref<8x8xf32, #tpu.memory_space<vmem>>, vector<8x8xf32>
      %cst_10 = arith.constant 4.8828125E-4 : f32
      %12 = vector.broadcast %cst_10 : f32 to vector<8x8xf32>
      %13 = arith.mulf %11, %12 : vector<8x8xf32>
      %c0_11 = arith.constant 0 : index
      %c0_12 = arith.constant 0 : index
      %14 = vector.load %arg2[%c0_11, %c0_12] : memref<8x8xf32, #tpu.memory_space<vmem>>, vector<8x8xf32>
      tpu.vector_store %arg2[%c0_11, %c0_12], %13 {strides = array<i32>} : memref<8x8xf32, #tpu.memory_space<vmem>>, vector<8x8xf32>,
    } else {
    }
    return
  }
  func.func @transform_0(%arg0: i32) -> (i32, i32) {
    %c0_i32 = arith.constant 0 : i32
    %c0_i32_0 = arith.constant 0 : i32
    return %c0_i32, %arg0 : i32, i32
  }
  func.func @transform_1(%arg0: i32) -> (i32, i32) {
    %c0_i32 = arith.constant 0 : i32
    %c0_i32_0 = arith.constant 0 : i32
    %c0_i32_1 = arith.constant 0 : i32
    return %c0_i32, %c0_i32_0 : i32, i32
  }
}

</mosaic_0001>

<bundles_post_ra>
// kernel: tpu_custom_call.1
= control target key start
LH: loop header
LB: loop body
LE: loop exit
PB: predicated region body
PF: predicated region fallthrough
CT: control target
= control target key end

     0   :  { %6 = vsyncpa [#allocation3], 0  ;;  %s175_s0 = inlined_call_operand.hbm [shape: f32[8,256], index: 0, kind: input, shape index: {}]   ;;  %s176_s1 = inlined_call_operand.hbm [shape: f32[8,8], index: 1, kind: output, shape index: {}]  }
   0x1   :  { %7 = vsyncpa [#allocation4], 0  ;;  %s13_s8 = sshll.u32 %s175_s0, 4  ;;  %s153_s9 = smov [#allocation2]   ;;  %s14_s8 = int_to_ptr.hbm [resolvable:$true] %s13_s8 }
   0x2   :  { %s15_s10 = sshll.u32 %s153_s9, 4  ;;  %s16_s10 = int_to_ptr.vmem [resolvable:$true] %s15_s10 }
   0x3   :  { %18 = dma.hbm_to_vmem [thread:$0]  %s14_s8, 256, %s16_s10, [#allocation3]  }
   0x4   :  { %149 = dma.done.wait [#allocation3], 256  }
   0x5   :  { %150 = vsyncadd [#allocation3], 4294967040  ;;  %v29_v0 = vld [vmem:[#allocation2] sm:$0xff]  ;;  %v30_v1 = vld [vmem:[#allocation2 + $0x8] sm:$0xff]  ;;  %vm27_vm0 = vcmask 64512   ;;  %v154_v2 = vmov 0.0  }
   0x6   :  { %47 = vmatpush.xpose.msra.mxu0 %v29_v0  ;;  %67 = vmatpush.xpose.msra.mxu1 %v30_v1  ;;  %28 = vst.msk [vmem:[#allocation5] sm:$0xff] %vm27_vm0, %v154_v2  ;;  %s155_s0 = smov [#allocation5]   ;;  %s88_s14 = sshll.u32 %s176_s1, 4  ;;  %s89_s14 = int_to_ptr.hbm [resolvable:$true] %s88_s14 }
   0x7   :  { %s86_s11 = sshll.u32 %s155_s0, 4  ;;  %s87_s11 = int_to_ptr.vmem [resolvable:$true] %s86_s11 }
   0x9   :  { %48 = vmatmul.f32.vlgmr.msra.gmra.mxu0 %v29_v0  ;;  %68 = vmatmul.f32.vlgmr.msra.gmra.mxu1 %v30_v1 }
   0xd   :  { %v31_v4 = vld [vmem:[#allocation5] sm:$0xff] }
  0x86   :  { %v49_v3 = vpop.f32.mrf.mxu0  ;;  %v69_v5 = vpop.f32.mrf.mxu1 }
  0x87   :  { %v70_v6 = vadd.f32 %v69_v5, %v49_v3 }
  0x89   :  { %v72_v7 = vadd.f32 %v70_v6, %v31_v4 }
  0x8b   :  { %74 = vst.msk [vmem:[#allocation5] sm:$0xff] %vm27_vm0, %v72_v7 }
  0x92   :  { %v78_v8 = vld [vmem:[#allocation5] sm:$0xff] }
  0x93   :  { %v79_v9 = vmul.f32 0.00048828125, %v78_v8 }
  0x95   :  { %80 = vst.msk [vmem:[#allocation5] sm:$0xff] %vm27_vm0, %v79_v9 }
  0x96   :  { %91 = dma.vmem_to_hbm [thread:$0]  %s87_s11, 128, %s89_s14, [#allocation4]  }
  0x97   :  { %151 = dma.done.wait [#allocation4], 128  }
  0x98   :  { %152 = vsyncadd [#allocation4], 4294967168 }
  0x99   :  { %96 = vsyncpa [#allocation3], 1 }
  0x9a   :  { %97 = vsyncpa [#allocation4], 1 }

</bundles_post_ra>
